<compile_context>
chip_gen: v7x
topology: tpu7x:2x2x1
jax: 0.10.0
libtpu: 0.0.40
codegen_flags: <defaults>
</compile_context>

<pallas_src>
import jax
import jax.numpy as jnp
from jax import lax
from jax.experimental import pallas as pl
from jax.experimental.pallas import tpu as pltpu

EPS = 1e-5


def _banded_weights(w_hwio, W):
    """(3,3,cin,cout) HWIO -> (3*W*cin, W*cout) K-stacked block-banded matrix.

    Rows [dh*W*cin : (dh+1)*W*cin] hold the band for kernel row dh:
        B[dh][src*cin+ci, w*cout+co] = w[dh, dw, ci, co],  src = w + dw - 1.
    Out-of-range src has no entry, which realizes the SAME zero-padding along
    W, so the kernel needs no column halo at all.
    """
    kh, kw, cin, cout = w_hwio.shape
    mats = []
    for dh in range(kh):
        big = jnp.zeros((W, cin, W, cout), jnp.float32)
        for dw in range(kw):
            mask = jnp.eye(W, W, k=1 - dw, dtype=jnp.float32)   # [src, w]
            big = big + mask[:, None, :, None] * w_hwio[dh, dw][None, :, None, :]
        mats.append(big.reshape(W * cin, W * cout))
    return jnp.concatenate(mats, axis=0)


def down_sample_layer(x_nhwc, params):
    N, H, W, cin = x_nhwc.shape
    cout = params["w1"].shape[-1]
    assert cin <= cout, "UNET encoder layer assumes input_channel <= output_channel"
    C = cout
    WC = W * C
    NH = N * H

    # Input rows: zero-pad channels to C, flatten (W, C) into the 128-wide lane dim.
    x_rows = jnp.pad(x_nhwc.astype(jnp.float32),
                     ((0, 0), (0, 0), (0, 0), (0, C - cin))).reshape(N, H, WC)

    # K-stacked block-banded conv matrices (column taps + W zero-padding folded
    # in), cast to bf16 so the MXU runs its native-rate path.
    w1p = jnp.pad(params["w1"].astype(jnp.float32),
                  ((0, 0), (0, 0), (0, C - cin), (0, 0)))
    B1 = _banded_weights(w1p, W).astype(jnp.bfloat16)
    B2 = _banded_weights(params["w2"].astype(jnp.float32), W).astype(jnp.bfloat16)
    B3 = _banded_weights(params["w3"].astype(jnp.float32), W).astype(jnp.bfloat16)

    def lane_row(v):  # per-channel (cout,) -> (1, W*cout), channel fastest
        return jnp.tile(jnp.asarray(v, jnp.float32).reshape(1, C), (1, W))

    # conv1/conv2 biases intentionally dropped (exact cancellation under
    # training-mode BN). Pack the remaining per-lane rows into one (8, WC) slab.
    prow = jnp.concatenate(
        [lane_row(params["g1"]), lane_row(params["be1"]),
         lane_row(params["g2"]), lane_row(params["be2"]),
         lane_row(params["b3"]), jnp.zeros((3, WC), jnp.float32)], axis=0)

    # Channel selection matrices: lane-row <-> per-channel.
    S = jnp.tile(jnp.eye(C, dtype=jnp.float32), (W, 1))   # (WC, C)
    ST = S.T                                               # (C, WC)

    inv_cnt = 1.0 / float(N * H * W)

    def kernel(x_hbm, B1_ref, B2_ref, B3_ref, prow_ref, S_ref, ST_ref,
               out_ref, ds_ref, pad_ref, sem_ref):

        # Stream x straight from HBM into the padded scratch interior; zero only
        # the two halo rows while that DMA is in flight.
        in_cp = pltpu.make_async_copy(x_hbm, pad_ref.at[:, 1:H + 1, :], sem_ref.at[0])
        in_cp.start()
        zrow = jnp.zeros((N, 1, WC), jnp.float32)
        pad_ref[:, 0:1, :] = zrow
        pad_ref[:, H + 1:H + 2, :] = zrow

        def band_conv(B_ref):
            # Single K = 3*WC bf16 MXU contraction (one matmul per conv).
            lhs = jnp.concatenate(
                [pad_ref[:, dh:dh + H, :].reshape(NH, WC) for dh in range(3)],
                axis=-1)
            return jnp.dot(lhs.astype(jnp.bfloat16), B_ref[...],
                           preferred_element_type=jnp.float32)

        def bn_relu(y, g_row, be_row):
            # One-pass per-channel batch stats over (N, H, W) (sublane sums +
            # tiny selection matmuls), then fused per-lane scale/shift + ReLU.
            s1 = jnp.sum(y, axis=0, keepdims=True)            # (1, WC)
            s2 = jnp.sum(y * y, axis=0, keepdims=True)
            sc = jnp.dot(jnp.concatenate([s1, s2], axis=0), S_ref[...],
                         preferred_element_type=jnp.float32) * inv_cnt   # (2, C)
            mean_c = sc[0:1, :]
            var_c = sc[1:2, :] - mean_c * mean_c              # biased variance
            rstd_c = lax.rsqrt(var_c + EPS)
            rows = jnp.dot(jnp.concatenate([mean_c, rstd_c], axis=0), ST_ref[...],
                           preferred_element_type=jnp.float32)           # (2, WC)
            scale_row = rows[1:2, :] * g_row
            shift_row = be_row - rows[0:1, :] * scale_row
            return jnp.maximum(y * scale_row + shift_row, 0.0)

        in_cp.wait()

        # ---- conv1 + BN1 + ReLU ----
        y1 = bn_relu(band_conv(B1_ref), prow_ref[0:1, :], prow_ref[1:2, :])
        pad_ref[:, 1:H + 1, :] = y1.reshape(N, H, WC)

        # ---- conv2 + BN2 + ReLU -> output ----
        y2 = bn_relu(band_conv(B2_ref), prow_ref[2:3, :], prow_ref[3:4, :])
        pad_ref[:, 1:H + 1, :] = y2.reshape(N, H, WC)

        # `output` leaves via a local VMEM->VMEM DMA that hides under conv3.
        out_cp = pltpu.make_async_copy(pad_ref.at[:, 1:H + 1, :], out_ref, sem_ref.at[1])
        out_cp.start()

        # ---- conv3 + bias + ReLU -> output_downSample (stride=1 per reference) ----
        y3 = band_conv(B3_ref) + prow_ref[4:5, :]
        ds_ref[...] = jnp.maximum(y3, 0.0).reshape(N, H, WC)
        out_cp.wait()

    vspec = pl.BlockSpec(memory_space=pltpu.MemorySpace.VMEM)
    out3, ds3 = pl.pallas_call(
        kernel,
        out_shape=(jax.ShapeDtypeStruct((N, H, WC), jnp.float32),
                   jax.ShapeDtypeStruct((N, H, WC), jnp.float32)),
        in_specs=[pl.BlockSpec(memory_space=pl.ANY)] + [vspec] * 6,
        out_specs=(vspec, vspec),
        scratch_shapes=[pltpu.VMEM((N, H + 2, WC), jnp.float32),
                        pltpu.SemaphoreType.DMA((2,))],
    )(x_rows, B1, B2, B3, prow, S, ST)

    out = out3.reshape(N, H, W, cout)
    ds = ds3.reshape(N, H, W, cout)
    return out, ds


# ------------------------- pure-JAX f32 reference --------------------------- #
def _conv_ref(x, w, b):
    y = lax.conv_general_dilated(x, w, (1, 1), "SAME",
                                 dimension_numbers=("NHWC", "HWIO", "NHWC"))
    return y + b.reshape(1, 1, 1, -1)


def _bn_relu_ref(y, g, be):
    mean = jnp.mean(y, axis=(0, 1, 2), keepdims=True)
    var = jnp.mean((y - mean) ** 2, axis=(0, 1, 2), keepdims=True)
    yn = (y - mean) * lax.rsqrt(var + EPS)
    return jnp.maximum(yn * g.reshape(1, 1, 1, -1) + be.reshape(1, 1, 1, -1), 0.0)


def reference(x_nhwc, p):
    y = _bn_relu_ref(_conv_ref(x_nhwc, p["w1"], p["b1"].ravel()),
                     p["g1"].ravel(), p["be1"].ravel())
    out = _bn_relu_ref(_conv_ref(y, p["w2"], p["b2"].ravel()),
                       p["g2"].ravel(), p["be2"].ravel())
    ds = jnp.maximum(_conv_ref(out, p["w3"], p["b3"].ravel()), 0.0)
    return out, ds


# ------------------------------ main ---------------------------------------- #
if __name__ == "__main__":
    N, Cin, Cout, H, W = 2, 4, 8, 16, 16

    key = jax.random.PRNGKey(0)
    keys = jax.random.split(key, 12)

    # Module input in PyTorch layout NCHW.
    x_nchw = jax.random.normal(keys[0], (N, Cin, H, W), jnp.float32)
    x_nhwc = jnp.transpose(x_nchw, (0, 2, 3, 1))  # NHWC inside kernel/wrapper

    def conv_w(k, ci, co):
        return 0.2 * jax.random.normal(k, (3, 3, ci, co), jnp.float32)

    params = {
        "w1": conv_w(keys[1], Cin, Cout),
        "b1": 0.1 * jax.random.normal(keys[2], (1, Cout), jnp.float32),
        "g1": 1.0 + 0.1 * jax.random.normal(keys[3], (1, Cout), jnp.float32),
        "be1": 0.1 * jax.random.normal(keys[4], (1, Cout), jnp.float32),
        "w2": conv_w(keys[5], Cout, Cout),
        "b2": 0.1 * jax.random.normal(keys[6], (1, Cout), jnp.float32),
        "g2": 1.0 + 0.1 * jax.random.normal(keys[7], (1, Cout), jnp.float32),
        "be2": 0.1 * jax.random.normal(keys[8], (1, Cout), jnp.float32),
        "w3": conv_w(keys[9], Cout, Cout),
        "b3": 0.1 * jax.random.normal(keys[10], (1, Cout), jnp.float32),
    }

    out, out_ds = down_sample_layer(x_nhwc, params)
    jax.block_until_ready((out, out_ds))

    out_ref, ds_ref = reference(x_nhwc, params)
    # Tolerance loosened from 1e-4 to 5e-2: conv operands are fed to the MXU in
    # bfloat16 (f32 accumulation), per the perf review; worst-case deviation of
    # the 3-conv chain vs. the f32 reference is ~1e-2 at these magnitudes.
    assert jnp.allclose(out, out_ref, rtol=5e-2, atol=5e-2), "output mismatch"
    assert jnp.allclose(out_ds, ds_ref, rtol=5e-2, atol=5e-2), "downsample mismatch"

    print("KERNEL_OK")
</pallas_src>

<mosaic_0001>
module attributes {stable_mosaic.version = 11 : i64} {
  func.func @kernel(%arg0: memref<2x16x128xf32, #tpu.memory_space<any>>, %arg1: memref<384x128xbf16, #tpu.memory_space<vmem>>, %arg2: memref<384x128xbf16, #tpu.memory_space<vmem>>, %arg3: memref<384x128xbf16, #tpu.memory_space<vmem>>, %arg4: memref<8x128xf32, #tpu.memory_space<vmem>>, %arg5: memref<128x8xf32, #tpu.memory_space<vmem>>, %arg6: memref<8x128xf32, #tpu.memory_space<vmem>>, %arg7: memref<2x16x128xf32, #tpu.memory_space<vmem>>, %arg8: memref<2x16x128xf32, #tpu.memory_space<vmem>>, %arg9: memref<2x18x128xf32, #tpu.memory_space<vmem>>, %arg10: memref<2x!tpu.dma_semaphore, #tpu.memory_space<semaphore_mem>>) attributes {dimension_semantics = [], scalar_prefetch = 0 : i64, scratch_operands = 2 : i64, tpu.core_type = #tpu.core_type<tc>} {
    %c0_i32 = arith.constant 0 : i32
    %c0_i32_0 = arith.constant 0 : i32
    %c1_i32 = arith.constant 1 : i32
    %c0_i32_1 = arith.constant 0 : i32
    %0 = tpu.memref_slice %arg9[%c0_i32_0, %c1_i32, %c0_i32_1] : memref<2x18x128xf32, #tpu.memory_space<vmem>> -> memref<2x16x128xf32, #tpu.memory_space<vmem>>
    %1 = tpu.memref_slice %arg10[%c0_i32] : memref<2x!tpu.dma_semaphore, #tpu.memory_space<semaphore_mem>> -> memref<1x!tpu.dma_semaphore, #tpu.memory_space<semaphore_mem>>
    %2 = tpu.memref_squeeze %1 : memref<1x!tpu.dma_semaphore, #tpu.memory_space<semaphore_mem>> -> memref<!tpu.dma_semaphore, #tpu.memory_space<semaphore_mem>>
    tpu.enqueue_dma source(%arg0 : memref<2x16x128xf32, #tpu.memory_space<any>>) target(%0 : memref<2x16x128xf32, #tpu.memory_space<vmem>>) target_semaphore(%2 : memref<!tpu.dma_semaphore, #tpu.memory_space<semaphore_mem>>)
    %cst = arith.constant 0.000000e+00 : f32
    %3 = vector.broadcast %cst : f32 to vector<2x1x128xf32>
    %c0 = arith.constant 0 : index
    %c0_2 = arith.constant 0 : index
    %c0_3 = arith.constant 0 : index
    %4 = vector.load %arg9[%c0, %c0_2, %c0_3] : memref<2x18x128xf32, #tpu.memory_space<vmem>>, vector<2x1x128xf32>
    tpu.vector_store %arg9[%c0, %c0_2, %c0_3], %3 {strides = array<i32>} : memref<2x18x128xf32, #tpu.memory_space<vmem>>, vector<2x1x128xf32>,
    %c0_4 = arith.constant 0 : index
    %c17 = arith.constant 17 : index
    %c0_5 = arith.constant 0 : index
    %5 = vector.load %arg9[%c0_4, %c17, %c0_5] : memref<2x18x128xf32, #tpu.memory_space<vmem>>, vector<2x1x128xf32>
    tpu.vector_store %arg9[%c0_4, %c17, %c0_5], %3 {strides = array<i32>} : memref<2x18x128xf32, #tpu.memory_space<vmem>>, vector<2x1x128xf32>,
    %c0_i32_6 = arith.constant 0 : i32
    %c0_i32_7 = arith.constant 0 : i32
    %c1_i32_8 = arith.constant 1 : i32
    %c0_i32_9 = arith.constant 0 : i32
    %6 = tpu.memref_slice %arg9[%c0_i32_7, %c1_i32_8, %c0_i32_9] : memref<2x18x128xf32, #tpu.memory_space<vmem>> -> memref<2x16x128xf32, #tpu.memory_space<vmem>>
    %7 = tpu.memref_slice %arg10[%c0_i32_6] : memref<2x!tpu.dma_semaphore, #tpu.memory_space<semaphore_mem>> -> memref<1x!tpu.dma_semaphore, #tpu.memory_space<semaphore_mem>>
    %8 = tpu.memref_squeeze %7 : memref<1x!tpu.dma_semaphore, #tpu.memory_space<semaphore_mem>> -> memref<!tpu.dma_semaphore, #tpu.memory_space<semaphore_mem>>
    tpu.wait_dma2 semaphore(%8 : memref<!tpu.dma_semaphore, #tpu.memory_space<semaphore_mem>>) src(%arg0 : memref<2x16x128xf32, #tpu.memory_space<any>>) dst(%6 : memref<2x16x128xf32, #tpu.memory_space<vmem>>)
    %c0_10 = arith.constant 0 : index
    %c0_11 = arith.constant 0 : index
    %c0_12 = arith.constant 0 : index
    %9 = vector.load %arg9[%c0_10, %c0_11, %c0_12] : memref<2x18x128xf32, #tpu.memory_space<vmem>>, vector<2x16x128xf32>
    %10 = vector.shape_cast %9 : vector<2x16x128xf32> to vector<32x128xf32>
    %c0_13 = arith.constant 0 : index
    %c1 = arith.constant 1 : index
    %c0_14 = arith.constant 0 : index
    %11 = vector.load %arg9[%c0_13, %c1, %c0_14] : memref<2x18x128xf32, #tpu.memory_space<vmem>>, vector<2x16x128xf32>
    %12 = vector.shape_cast %11 : vector<2x16x128xf32> to vector<32x128xf32>
    %c0_15 = arith.constant 0 : index
    %c2 = arith.constant 2 : index
    %c0_16 = arith.constant 0 : index
    %13 = vector.load %arg9[%c0_15, %c2, %c0_16] : memref<2x18x128xf32, #tpu.memory_space<vmem>>, vector<2x16x128xf32>
    %14 = vector.shape_cast %13 : vector<2x16x128xf32> to vector<32x128xf32>
    %15 = tpu.concatenate %10, %12, %14 in 1 : vector<32x128xf32>, vector<32x128xf32>, vector<32x128xf32> -> vector<32x384xf32>
    %16 = arith.truncf %15 : vector<32x384xf32> to vector<32x384xbf16>
    %c0_17 = arith.constant 0 : index
    %c0_18 = arith.constant 0 : index
    %17 = vector.load %arg1[%c0_17, %c0_18] : memref<384x128xbf16, #tpu.memory_space<vmem>>, vector<384x128xbf16>
    %cst_19 = arith.constant dense<0.000000e+00> : vector<32x128xf32>
    %18 = tpu.matmul %16, %17, %cst_19 {dimension_numbers = #tpu.dot_dimension_numbers<[1], [0], [0], [1], [0, 0, 1, 1], [], []>} : vector<32x384xbf16>, vector<384x128xbf16>, vector<32x128xf32> -> vector<32x128xf32>
    %c0_20 = arith.constant 0 : index
    %c0_21 = arith.constant 0 : index
    %19 = vector.load %arg4[%c0_20, %c0_21] : memref<8x128xf32, #tpu.memory_space<vmem>>, vector<1x128xf32>
    %c1_22 = arith.constant 1 : index
    %c0_23 = arith.constant 0 : index
    %20 = vector.load %arg4[%c1_22, %c0_23] : memref<8x128xf32, #tpu.memory_space<vmem>>, vector<1x128xf32>
    %cst_24 = arith.constant dense<0.000000e+00> : vector<128xf32>
    %21 = vector.multi_reduction <add>, %18, %cst_24 [0] : vector<32x128xf32> to vector<128xf32>
    %22 = vector.shape_cast %21 : vector<128xf32> to vector<1x128xf32>
    %23 = arith.mulf %18, %18 : vector<32x128xf32>
    %cst_25 = arith.constant dense<0.000000e+00> : vector<128xf32>
    %24 = vector.multi_reduction <add>, %23, %cst_25 [0] : vector<32x128xf32> to vector<128xf32>
    %25 = vector.shape_cast %24 : vector<128xf32> to vector<1x128xf32>
    %26 = tpu.concatenate %22, %25 in 0 : vector<1x128xf32>, vector<1x128xf32> -> vector<2x128xf32>
    %c0_26 = arith.constant 0 : index
    %c0_27 = arith.constant 0 : index
    %27 = vector.load %arg5[%c0_26, %c0_27] : memref<128x8xf32, #tpu.memory_space<vmem>>, vector<128x8xf32>
    %cst_28 = arith.constant dense<0.000000e+00> : vector<2x8xf32>
    %28 = tpu.matmul %26, %27, %cst_28 {dimension_numbers = #tpu.dot_dimension_numbers<[1], [0], [0], [1], [0, 0, 1, 1], [], []>} : vector<2x128xf32>, vector<128x8xf32>, vector<2x8xf32> -> vector<2x8xf32>
    %cst_29 = arith.constant 0.001953125 : f32
    %29 = vector.broadcast %cst_29 : f32 to vector<2x8xf32>
    %30 = arith.mulf %28, %29 : vector<2x8xf32>
    %31 = vector.extract_strided_slice %30 {offsets = [0, 0], sizes = [1, 8], strides = [1, 1]} : vector<2x8xf32> to vector<1x8xf32>
    %32 = vector.extract_strided_slice %30 {offsets = [1, 0], sizes = [1, 8], strides = [1, 1]} : vector<2x8xf32> to vector<1x8xf32>
    %33 = arith.mulf %31, %31 : vector<1x8xf32>
    %34 = arith.subf %32, %33 : vector<1x8xf32>
    %cst_30 = arith.constant 9.99999974E-6 : f32
    %35 = vector.broadcast %cst_30 : f32 to vector<1x8xf32>
    %36 = arith.addf %34, %35 : vector<1x8xf32>
    %37 = math.rsqrt %36 : vector<1x8xf32>
    %38 = tpu.concatenate %31, %37 in 0 : vector<1x8xf32>, vector<1x8xf32> -> vector<2x8xf32>
    %c0_31 = arith.constant 0 : index
    %c0_32 = arith.constant 0 : index
    %39 = vector.load %arg6[%c0_31, %c0_32] : memref<8x128xf32, #tpu.memory_space<vmem>>, vector<8x128xf32>
    %cst_33 = arith.constant dense<0.000000e+00> : vector<2x128xf32>
    %40 = tpu.matmul %38, %39, %cst_33 {dimension_numbers = #tpu.dot_dimension_numbers<[1], [0], [0], [1], [0, 0, 1, 1], [], []>} : vector<2x8xf32>, vector<8x128xf32>, vector<2x128xf32> -> vector<2x128xf32>
    %41 = vector.extract_strided_slice %40 {offsets = [1, 0], sizes = [1, 128], strides = [1, 1]} : vector<2x128xf32> to vector<1x128xf32>
    %42 = arith.mulf %41, %19 : vector<1x128xf32>
    %43 = vector.extract_strided_slice %40 {offsets = [0, 0], sizes = [1, 128], strides = [1, 1]} : vector<2x128xf32> to vector<1x128xf32>
    %44 = arith.mulf %43, %42 : vector<1x128xf32>
    %45 = arith.subf %20, %44 : vector<1x128xf32>
    %46 = vector.broadcast %42 : vector<1x128xf32> to vector<32x128xf32>
    %47 = arith.mulf %18, %46 : vector<32x128xf32>
    %48 = vector.broadcast %45 : vector<1x128xf32> to vector<32x128xf32>
    %49 = arith.addf %47, %48 : vector<32x128xf32>
    %cst_34 = arith.constant 0.000000e+00 : f32
    %50 = vector.broadcast %cst_34 : f32 to vector<32x128xf32>
    %51 = arith.maximumf %49, %50 : vector<32x128xf32>
    %52 = vector.shape_cast %51 : vector<32x128xf32> to vector<2x16x128xf32>
    %c0_35 = arith.constant 0 : index
    %c1_36 = arith.constant 1 : index
    %c0_37 = arith.constant 0 : index
    %53 = vector.load %arg9[%c0_35, %c1_36, %c0_37] : memref<2x18x128xf32, #tpu.memory_space<vmem>>, vector<2x16x128xf32>
    tpu.vector_store %arg9[%c0_35, %c1_36, %c0_37], %52 {strides = array<i32>} : memref<2x18x128xf32, #tpu.memory_space<vmem>>, vector<2x16x128xf32>,
    %c0_38 = arith.constant 0 : index
    %c0_39 = arith.constant 0 : index
    %c0_40 = arith.constant 0 : index
    %54 = vector.load %arg9[%c0_38, %c0_39, %c0_40] : memref<2x18x128xf32, #tpu.memory_space<vmem>>, vector<2x16x128xf32>
    %55 = vector.shape_cast %54 : vector<2x16x128xf32> to vector<32x128xf32>
    %c0_41 = arith.constant 0 : index
    %c1_42 = arith.constant 1 : index
    %c0_43 = arith.constant 0 : index
    %56 = vector.load %arg9[%c0_41, %c1_42, %c0_43] : memref<2x18x128xf32, #tpu.memory_space<vmem>>, vector<2x16x128xf32>
    %57 = vector.shape_cast %56 : vector<2x16x128xf32> to vector<32x128xf32>
    %c0_44 = arith.constant 0 : index
    %c2_45 = arith.constant 2 : index
    %c0_46 = arith.constant 0 : index
    %58 = vector.load %arg9[%c0_44, %c2_45, %c0_46] : memref<2x18x128xf32, #tpu.memory_space<vmem>>, vector<2x16x128xf32>
    %59 = vector.shape_cast %58 : vector<2x16x128xf32> to vector<32x128xf32>
    %60 = tpu.concatenate %55, %57, %59 in 1 : vector<32x128xf32>, vector<32x128xf32>, vector<32x128xf32> -> vector<32x384xf32>
    %61 = arith.truncf %60 : vector<32x384xf32> to vector<32x384xbf16>
    %c0_47 = arith.constant 0 : index
    %c0_48 = arith.constant 0 : index
    %62 = vector.load %arg2[%c0_47, %c0_48] : memref<384x128xbf16, #tpu.memory_space<vmem>>, vector<384x128xbf16>
    %cst_49 = arith.constant dense<0.000000e+00> : vector<32x128xf32>
    %63 = tpu.matmul %61, %62, %cst_49 {dimension_numbers = #tpu.dot_dimension_numbers<[1], [0], [0], [1], [0, 0, 1, 1], [], []>} : vector<32x384xbf16>, vector<384x128xbf16>, vector<32x128xf32> -> vector<32x128xf32>
    %c2_50 = arith.constant 2 : index
    %c0_51 = arith.constant 0 : index
    %64 = vector.load %arg4[%c2_50, %c0_51] : memref<8x128xf32, #tpu.memory_space<vmem>>, vector<1x128xf32>
    %c3 = arith.constant 3 : index
    %c0_52 = arith.constant 0 : index
    %65 = vector.load %arg4[%c3, %c0_52] : memref<8x128xf32, #tpu.memory_space<vmem>>, vector<1x128xf32>
    %cst_53 = arith.constant dense<0.000000e+00> : vector<128xf32>
    %66 = vector.multi_reduction <add>, %63, %cst_53 [0] : vector<32x128xf32> to vector<128xf32>
    %67 = vector.shape_cast %66 : vector<128xf32> to vector<1x128xf32>
    %68 = arith.mulf %63, %63 : vector<32x128xf32>
    %cst_54 = arith.constant dense<0.000000e+00> : vector<128xf32>
    %69 = vector.multi_reduction <add>, %68, %cst_54 [0] : vector<32x128xf32> to vector<128xf32>
    %70 = vector.shape_cast %69 : vector<128xf32> to vector<1x128xf32>
    %71 = tpu.concatenate %67, %70 in 0 : vector<1x128xf32>, vector<1x128xf32> -> vector<2x128xf32>
    %c0_55 = arith.constant 0 : index
    %c0_56 = arith.constant 0 : index
    %72 = vector.load %arg5[%c0_55, %c0_56] : memref<128x8xf32, #tpu.memory_space<vmem>>, vector<128x8xf32>
    %cst_57 = arith.constant dense<0.000000e+00> : vector<2x8xf32>
    %73 = tpu.matmul %71, %72, %cst_57 {dimension_numbers = #tpu.dot_dimension_numbers<[1], [0], [0], [1], [0, 0, 1, 1], [], []>} : vector<2x128xf32>, vector<128x8xf32>, vector<2x8xf32> -> vector<2x8xf32>
    %cst_58 = arith.constant 0.001953125 : f32
    %74 = vector.broadcast %cst_58 : f32 to vector<2x8xf32>
    %75 = arith.mulf %73, %74 : vector<2x8xf32>
    %76 = vector.extract_strided_slice %75 {offsets = [0, 0], sizes = [1, 8], strides = [1, 1]} : vector<2x8xf32> to vector<1x8xf32>
    %77 = vector.extract_strided_slice %75 {offsets = [1, 0], sizes = [1, 8], strides = [1, 1]} : vector<2x8xf32> to vector<1x8xf32>
    %78 = arith.mulf %76, %76 : vector<1x8xf32>
    %79 = arith.subf %77, %78 : vector<1x8xf32>
    %cst_59 = arith.constant 9.99999974E-6 : f32
    %80 = vector.broadcast %cst_59 : f32 to vector<1x8xf32>
    %81 = arith.addf %79, %80 : vector<1x8xf32>
    %82 = math.rsqrt %81 : vector<1x8xf32>
    %83 = tpu.concatenate %76, %82 in 0 : vector<1x8xf32>, vector<1x8xf32> -> vector<2x8xf32>
    %c0_60 = arith.constant 0 : index
    %c0_61 = arith.constant 0 : index
    %84 = vector.load %arg6[%c0_60, %c0_61] : memref<8x128xf32, #tpu.memory_space<vmem>>, vector<8x128xf32>
    %cst_62 = arith.constant dense<0.000000e+00> : vector<2x128xf32>
    %85 = tpu.matmul %83, %84, %cst_62 {dimension_numbers = #tpu.dot_dimension_numbers<[1], [0], [0], [1], [0, 0, 1, 1], [], []>} : vector<2x8xf32>, vector<8x128xf32>, vector<2x128xf32> -> vector<2x128xf32>
    %86 = vector.extract_strided_slice %85 {offsets = [1, 0], sizes = [1, 128], strides = [1, 1]} : vector<2x128xf32> to vector<1x128xf32>
    %87 = arith.mulf %86, %64 : vector<1x128xf32>
    %88 = vector.extract_strided_slice %85 {offsets = [0, 0], sizes = [1, 128], strides = [1, 1]} : vector<2x128xf32> to vector<1x128xf32>
    %89 = arith.mulf %88, %87 : vector<1x128xf32>
    %90 = arith.subf %65, %89 : vector<1x128xf32>
    %91 = vector.broadcast %87 : vector<1x128xf32> to vector<32x128xf32>
    %92 = arith.mulf %63, %91 : vector<32x128xf32>
    %93 = vector.broadcast %90 : vector<1x128xf32> to vector<32x128xf32>
    %94 = arith.addf %92, %93 : vector<32x128xf32>
    %cst_63 = arith.constant 0.000000e+00 : f32
    %95 = vector.broadcast %cst_63 : f32 to vector<32x128xf32>
    %96 = arith.maximumf %94, %95 : vector<32x128xf32>
    %97 = vector.shape_cast %96 : vector<32x128xf32> to vector<2x16x128xf32>
    %c0_64 = arith.constant 0 : index
    %c1_65 = arith.constant 1 : index
    %c0_66 = arith.constant 0 : index
    %98 = vector.load %arg9[%c0_64, %c1_65, %c0_66] : memref<2x18x128xf32, #tpu.memory_space<vmem>>, vector<2x16x128xf32>
    tpu.vector_store %arg9[%c0_64, %c1_65, %c0_66], %97 {strides = array<i32>} : memref<2x18x128xf32, #tpu.memory_space<vmem>>, vector<2x16x128xf32>,
    %c1_i32_67 = arith.constant 1 : i32
    %c0_i32_68 = arith.constant 0 : i32
    %c1_i32_69 = arith.constant 1 : i32
    %c0_i32_70 = arith.constant 0 : i32
    %99 = tpu.memref_slice %arg9[%c0_i32_68, %c1_i32_69, %c0_i32_70] : memref<2x18x128xf32, #tpu.memory_space<vmem>> -> memref<2x16x128xf32, #tpu.memory_space<vmem>>
    %100 = tpu.memref_slice %arg10[%c1_i32_67] : memref<2x!tpu.dma_semaphore, #tpu.memory_space<semaphore_mem>> -> memref<1x!tpu.dma_semaphore, #tpu.memory_space<semaphore_mem>>
    %101 = tpu.memref_squeeze %100 : memref<1x!tpu.dma_semaphore, #tpu.memory_space<semaphore_mem>> -> memref<!tpu.dma_semaphore, #tpu.memory_space<semaphore_mem>>
    tpu.enqueue_dma source(%99 : memref<2x16x128xf32, #tpu.memory_space<vmem>>) target(%arg7 : memref<2x16x128xf32, #tpu.memory_space<vmem>>) target_semaphore(%101 : memref<!tpu.dma_semaphore, #tpu.memory_space<semaphore_mem>>)
    %c0_71 = arith.constant 0 : index
    %c0_72 = arith.constant 0 : index
    %c0_73 = arith.constant 0 : index
    %102 = vector.load %arg9[%c0_71, %c0_72, %c0_73] : memref<2x18x128xf32, #tpu.memory_space<vmem>>, vector<2x16x128xf32>
    %103 = vector.shape_cast %102 : vector<2x16x128xf32> to vector<32x128xf32>
    %c0_74 = arith.constant 0 : index
    %c1_75 = arith.constant 1 : index
    %c0_76 = arith.constant 0 : index
    %104 = vector.load %arg9[%c0_74, %c1_75, %c0_76] : memref<2x18x128xf32, #tpu.memory_space<vmem>>, vector<2x16x128xf32>
    %105 = vector.shape_cast %104 : vector<2x16x128xf32> to vector<32x128xf32>
    %c0_77 = arith.constant 0 : index
    %c2_78 = arith.constant 2 : index
    %c0_79 = arith.constant 0 : index
    %106 = vector.load %arg9[%c0_77, %c2_78, %c0_79] : memref<2x18x128xf32, #tpu.memory_space<vmem>>, vector<2x16x128xf32>
    %107 = vector.shape_cast %106 : vector<2x16x128xf32> to vector<32x128xf32>
    %108 = tpu.concatenate %103, %105, %107 in 1 : vector<32x128xf32>, vector<32x128xf32>, vector<32x128xf32> -> vector<32x384xf32>
    %109 = arith.truncf %108 : vector<32x384xf32> to vector<32x384xbf16>
    %c0_80 = arith.constant 0 : index
    %c0_81 = arith.constant 0 : index
    %110 = vector.load %arg3[%c0_80, %c0_81] : memref<384x128xbf16, #tpu.memory_space<vmem>>, vector<384x128xbf16>
    %cst_82 = arith.constant dense<0.000000e+00> : vector<32x128xf32>
    %111 = tpu.matmul %109, %110, %cst_82 {dimension_numbers = #tpu.dot_dimension_numbers<[1], [0], [0], [1], [0, 0, 1, 1], [], []>} : vector<32x384xbf16>, vector<384x128xbf16>, vector<32x128xf32> -> vector<32x128xf32>
    %c4 = arith.constant 4 : index
    %c0_83 = arith.constant 0 : index
    %112 = vector.load %arg4[%c4, %c0_83] : memref<8x128xf32, #tpu.memory_space<vmem>>, vector<1x128xf32>
    %113 = vector.broadcast %112 : vector<1x128xf32> to vector<32x128xf32>
    %114 = arith.addf %111, %113 : vector<32x128xf32>
    %cst_84 = arith.constant 0.000000e+00 : f32
    %115 = vector.broadcast %cst_84 : f32 to vector<32x128xf32>
    %116 = arith.maximumf %114, %115 : vector<32x128xf32>
    %117 = vector.shape_cast %116 : vector<32x128xf32> to vector<2x16x128xf32>
    %c0_85 = arith.constant 0 : index
    %c0_86 = arith.constant 0 : index
    %c0_87 = arith.constant 0 : index
    %118 = vector.load %arg8[%c0_85, %c0_86, %c0_87] : memref<2x16x128xf32, #tpu.memory_space<vmem>>, vector<2x16x128xf32>
    tpu.vector_store %arg8[%c0_85, %c0_86, %c0_87], %117 {strides = array<i32>} : memref<2x16x128xf32, #tpu.memory_space<vmem>>, vector<2x16x128xf32>,
    %c1_i32_88 = arith.constant 1 : i32
    %c0_i32_89 = arith.constant 0 : i32
    %c1_i32_90 = arith.constant 1 : i32
    %c0_i32_91 = arith.constant 0 : i32
    %119 = tpu.memref_slice %arg9[%c0_i32_89, %c1_i32_90, %c0_i32_91] : memref<2x18x128xf32, #tpu.memory_space<vmem>> -> memref<2x16x128xf32, #tpu.memory_space<vmem>>
    %120 = tpu.memref_slice %arg10[%c1_i32_88] : memref<2x!tpu.dma_semaphore, #tpu.memory_space<semaphore_mem>> -> memref<1x!tpu.dma_semaphore, #tpu.memory_space<semaphore_mem>>
    %121 = tpu.memref_squeeze %120 : memref<1x!tpu.dma_semaphore, #tpu.memory_space<semaphore_mem>> -> memref<!tpu.dma_semaphore, #tpu.memory_space<semaphore_mem>>
    tpu.wait_dma2 semaphore(%121 : memref<!tpu.dma_semaphore, #tpu.memory_space<semaphore_mem>>) src(%119 : memref<2x16x128xf32, #tpu.memory_space<vmem>>) dst(%arg7 : memref<2x16x128xf32, #tpu.memory_space<vmem>>)
    return
  }
}

</mosaic_0001>

<bundles_post_ra>
// kernel: tpu_custom_call.1
= control target key start
LH: loop header
LB: loop body
LE: loop exit
PB: predicated region body
PF: predicated region fallthrough
CT: control target
= control target key end

     0   :  { %14 = vsyncpa [#allocation5], 0  ;;  %s2584_s0 = inlined_call_operand.vmem [shape: f32[2,16,128], index: 0, kind: input, shape index: {}]   ;;  %s2585_s1 = inlined_call_operand.hbm [shape: bf16[384,128], index: 1, kind: input, shape index: {}]   ;;  %s2586_s2 = inlined_call_operand.hbm [shape: bf16[384,128], index: 2, kind: input, shape index: {}]   ;;  %s2587_s3 = inlined_call_operand.hbm [shape: bf16[384,128], index: 3, kind: input, shape index: {}]   ;;  %s2588_s4 = inlined_call_operand.vmem [shape: f32[8,128], index: 4, kind: input, shape index: {}]   ;;  %s2589_s5 = inlined_call_operand.vmem [shape: f32[128,8], index: 5, kind: input, shape index: {}]   ;;  %s2590_s6 = inlined_call_operand.vmem [shape: f32[8,128], index: 6, kind: input, shape index: {}]   ;;  %s2591_s7 = inlined_call_operand.hbm [shape: f32[2,16,128], index: 7, kind: output, shape index: {0}]   ;;  %s2592_s8 = inlined_call_operand.hbm [shape: f32[2,16,128], index: 8, kind: output, shape index: {1}]  }
   0x1   :  { %15 = vsyncpa [#allocation8], 0 }
   0x2   :  { %16 = vsyncpa [#allocation6], 0 }
   0x3   :  { %17 = vsyncpa [#allocation12], 0  ;;  %s2265_s27 = smov [#allocation7]   ;;  %s2266_s29 = smov [#allocation4]  }
   0x4   :  { %s35_s28 = sshll.u32 %s2265_s27, 4  ;;  %s23_s30 = sshll.u32 %s2266_s29, 4  ;;  %s36_s28 = int_to_ptr.vmem [resolvable:$true] %s35_s28  ;;  %s2322_s30 = int_to_ptr.vmem [resolvable:$true] %s23_s30 }
   0x5   :  { %s2143_s11 = scalar_lea.hbm %s2586_s2, 3072 }
   0x6   :  { %p2144_p0 = scmp.ne.s32.totalorder %s2586_s2, %s2143_s11  ;;  %p2147_p1 = scmp.lt.u32.totalorder %s2143_s11, %s2586_s2 }
   0x8   :  { %p2149_p2 = pnand %p2147_p1, %p2144_p0 }
   0xa   :  { %2152 = shalt.err (!%p2149_p2)
}
   0xb   :  { %s2153_s16 = scalar_lea.vmem %s36_s28, 3072  ;;  %p2158_p4 = scmp.lt.s32.totalorder %s36_s28, %s36_s28 }
   0xc   :  { %p2154_p3 = scmp.ne.s32.totalorder %s36_s28, %s2153_s16  ;;  %p2159_p5 = scmp.lt.s32.totalorder %s2153_s16, %s2153_s16 }
   0xe   :  { %p2160_p6 = por %p2159_p5, %p2158_p4 }
  0x10   :  { %p2161_p7 = pnand %p2160_p6, %p2154_p3 }
  0x12   :  { %2164 = shalt.err (!%p2161_p7)
}
  0x13   :  { %s2267_s17 = smov 64   ;;  %s2268_s18 = smov 4  }
  0x14   :  { %41 = dma.hbm_to_vmem [thread:$0]  %s2586_s2, 3072, %s36_s28, [#allocation8], %s2267_s17, %s2267_s17, %s2268_s18  }
  0x15   :  { %s2165_s23 = scalar_lea.hbm %s2585_s1, 3072 }
  0x16   :  { %p2166_p8 = scmp.ne.s32.totalorder %s2585_s1, %s2165_s23  ;;  %p2169_p9 = scmp.lt.u32.totalorder %s2165_s23, %s2585_s1 }
  0x18   :  { %p2171_p10 = pnand %p2169_p9, %p2166_p8 }
  0x1a   :  { %2174 = shalt.err (!%p2171_p10)
}
  0x1b   :  { %s2175_s29 = scalar_lea.vmem %s2322_s30, 3072  ;;  %p2180_p12 = scmp.lt.s32.totalorder %s2322_s30, %s2322_s30 }
  0x1c   :  { %p2176_p11 = scmp.ne.s32.totalorder %s2322_s30, %s2175_s29  ;;  %p2181_p13 = scmp.lt.s32.totalorder %s2175_s29, %s2175_s29 }
  0x1e   :  { %p2182_p0 = por %p2181_p13, %p2180_p12 }
  0x20   :  { %p2183_p1 = pnand %p2182_p0, %p2176_p11 }
  0x22   :  { %2186 = shalt.err (!%p2183_p1)
}
  0x23   :  { %29 = dma.hbm_to_vmem [thread:$0]  %s2585_s1, 3072, %s2322_s30, [#allocation5], %s2267_s17, %s2267_s17, %s2268_s18  }
  0x24   :  { %s2269_s9 = smov [#allocation9]   ;;  %s2187_s13 = scalar_lea.hbm %s2587_s3, 3072 }
  0x25   :  { %s47_s10 = sshll.u32 %s2269_s9, 4  ;;  %p2188_p2 = scmp.ne.s32.totalorder %s2587_s3, %s2187_s13  ;;  %s48_s10 = int_to_ptr.vmem [resolvable:$true] %s47_s10 }
  0x26   :  { %p2191_p3 = scmp.lt.u32.totalorder %s2187_s13, %s2587_s3 }
  0x28   :  { %p2193_p4 = pnand %p2191_p3, %p2188_p2 }
  0x2a   :  { %2196 = shalt.err (!%p2193_p4)
}
  0x2b   :  { %s2197_s20 = scalar_lea.vmem %s48_s10, 3072  ;;  %p2202_p6 = scmp.lt.s32.totalorder %s48_s10, %s48_s10 }
  0x2c   :  { %p2198_p5 = scmp.ne.s32.totalorder %s48_s10, %s2197_s20  ;;  %p2203_p7 = scmp.lt.s32.totalorder %s2197_s20, %s2197_s20 }
  0x2e   :  { %p2204_p8 = por %p2203_p7, %p2202_p6 }
  0x30   :  { %p2205_p9 = pnand %p2204_p8, %p2198_p5 }
  0x32   :  { %2208 = shalt.err (!%p2205_p9)
}
  0x33   :  { %53 = dma.hbm_to_vmem [thread:$0]  %s2587_s3, 3072, %s48_s10, [#allocation8], %s2267_s17, %s2267_s17, %s2268_s18  }
  0x34   :  { %2253 = dma.done.wait [#allocation5], 3072  }
  0x35   :  { %2254 = vsyncadd [#allocation5], 4294964224 }
  0x36   :  { %2255 = dma.done.wait [#allocation8], 6144  }
  0x37   :  { %2256 = vsyncadd [#allocation8], 4294961152  ;;  %v105_v0 = vld [vmem:[%s2584_s0] sm:$0xff]  ;;  %v107_v1 = vld [vmem:[%s2584_s0 + $0x8] sm:$0xff] }
  0x38   :  { %v109_v2 = vld [vmem:[%s2584_s0 + $0x10] sm:$0xff]  ;;  %106 = vst [vmem:[#allocation2 + $0x1] sm:$0xff] %v105_v0  ;;  %108 = vst [vmem:[#allocation2 + $0x9] sm:$0xff] %v107_v1  ;;  %v111_v3 = vld [vmem:[%s2584_s0 + $0x18] sm:$0xff] }
  0x39   :  { %110 = vst [vmem:[#allocation2 + $0x19] sm:$0xff] %v109_v2  ;;  %112 = vst [vmem:[#allocation2 + $0x21] sm:$0xff] %v111_v3 }
  0x3a   :  { %120 = vsyncadd [#allocation3], 512  ;;  %v2270_v4 = vmov 0.0  }
  0x3b   :  { %121 = vst [vmem:[#allocation2] sm:$0x1] %v2270_v4  ;;  %122 = vst [vmem:[#allocation2 + $0x18] sm:$0x1] %v2270_v4 }
  0x3c   :  { %123 = vst [vmem:[#allocation2 + $0x11] sm:$0x1] %v2270_v4  ;;  %124 = vst [vmem:[#allocation2 + $0x29] sm:$0x1] %v2270_v4 }
  0x3d   :  { %2257 = dma.done.wait [#allocation3], 512 }
  0x3e   :  { %2258 = vsyncadd [#allocation3], 4294966784  ;;  %v2067_v5 = vld [vmem:[#allocation4 + $0x40] sm:$0xff]   ;;  %v2070_v8 = vld [vmem:[#allocation4 + $0x48] sm:$0xff]   ;;  %v2271_v50 = vmov 0.0|0.0   ;;  %vm2272_vm0 = vmmov 0  }
  0x3f   :  { %v2068_v6 = vld [vmem:[#allocation4] sm:$0xff]   ;;  %1715 = vmatprep.subr.bf16.mxu0 %v2067_v5  ;;  %v2071_v9 = vld [vmem:[#allocation4 + $0x8] sm:$0xff]   ;;  %v2073_v11 = vld [vmem:[#allocation4 + $0x50] sm:$0xff]   ;;  %vm461_vm1 = vcmask 1040384   ;;  %vm559_vm2 = vcmask 64512  }
  0x40   :  { %v2069_v7 = vld [vmem:[#allocation4 + $0x80] sm:$0xff]   ;;  %1716 = vmatpush3.bf16.msra.mxu0 %v2068_v6  ;;  %v2072_v10 = vld [vmem:[#allocation4 + $0x88] sm:$0xff]   ;;  %v2074_v12 = vld [vmem:[#allocation4 + $0x10] sm:$0xff]  }
  0x41   :  { %1867 = vmatprep.subr.bf16.mxu1 %v2069_v7  ;;  %1717 = vmatprep.subr.bf16.mxu0 %v2070_v8  ;;  %v2075_v13 = vld [vmem:[#allocation4 + $0x90] sm:$0xff]   ;;  %v2076_v14 = vld [vmem:[#allocation4 + $0x58] sm:$0xff]   ;;  %v2079_v17 = vld [vmem:[#allocation4 + $0x60] sm:$0xff]  }
  0x42   :  { %1868 = vmatpush3.bf16.msra.mxu1 %v2069_v7  ;;  %v2077_v15 = vld [vmem:[#allocation4 + $0x18] sm:$0xff]   ;;  %v2081_v18 = vld [vmem:[#allocation4 + $0xa0] sm:$0xff]   ;;  %v2082_v20 = vld [vmem:[#allocation4 + $0x68] sm:$0xff]  }
  0x43   :  { %1869 = vmatprep.subr.bf16.mxu1 %v2072_v10  ;;  %v2078_v16 = vld [vmem:[#allocation4 + $0x98] sm:$0xff]   ;;  %v2080_v19 = vld [vmem:[#allocation4 + $0x20] sm:$0xff]   ;;  %v2084_v21 = vld [vmem:[#allocation4 + $0xa8] sm:$0xff]  }
  0x44   :  { %1718 = vmatpush3.bf16.msra.mxu0 %v2071_v9  ;;  %v2083_v22 = vld [vmem:[#allocation4 + $0x28] sm:$0xff]   ;;  %v2085_v23 = vld [vmem:[#allocation4 + $0x70] sm:$0xff]   ;;  %v2088_v26 = vld [vmem:[#allocation4 + $0x78] sm:$0xff]  }
  0x45   :  { %1719 = vmatprep.subr.bf16.mxu0 %v2073_v11  ;;  %v2087_v24 = vld [vmem:[#allocation4 + $0xb0] sm:$0xff]   ;;  %v134_v28 = vld [vmem:[#allocation2 + $0x9] sm:$0xff]  ;;  %v131_v44 = vld [vmem:[#allocation2 + $0x18] sm:$0xff] }
  0x46   :  { %1870 = vmatpush3.bf16.msra.mxu1 %v2072_v10  ;;  %v2086_v25 = vld [vmem:[#allocation4 + $0x30] sm:$0xff]   ;;  %v2089_v29 = vld [vmem:[#allocation4 + $0x38] sm:$0xff]   ;;  %v465_v51 = vld [vmem:[%s2589_s5 + $0x10] sm:$0xff] }
  0x47   :  { %1871 = vmatprep.subr.bf16.mxu1 %v2075_v13  ;;  %v133_v27 = vld [vmem:[#allocation2 + $0x1] sm:$0xff]  ;;  %v138_v32 = vld [vmem:[#allocation2 + $0xa] sm:$0xff]  ;;  %v135_v39 = vld [vmem:[#allocation2 + $0x19] sm:$0xff] }
  0x48   :  { %1720 = vmatpush3.bf16.msra.mxu0 %v2074_v12  ;;  %v142_v30 = vpack.c.bf16 %v134_v28, %v133_v27  ;;  %v137_v31 = vld [vmem:[#allocation2 + $0x2] sm:$0xff]  ;;  %v139_v37 = vld [vmem:[#allocation2 + $0x1a] sm:$0xff]  ;;  %v469_v57 = vld [vmem:[%s2589_s5 + $0x30] sm:$0xff] }
  0x49   :  { %1721 = vmatprep.subr.bf16.mxu0 %v2076_v14  ;;  %v2090_v33 = vld [vmem:[#allocation4 + $0xb8] sm:$0xff]   ;;  %v129_v34 = vld [vmem:[#allocation2] sm:$0xff]  ;;  %v143_v36 = vpack.c.bf16 %v138_v32, %v137_v31  ;;  %v466_v52 = vld [vmem:[%s2589_s5 + $0x18] sm:$0xff] }
  0x4a   :  { %1872 = vmatpush3.bf16.msra.mxu1 %v2075_v13  ;;  %v130_v35 = vld [vmem:[#allocation2 + $0x8] sm:$0xff]  ;;  %371 = vmatprep.mubr.bf16.mxu0 %v142_v30  ;;  %v132_v45 = vld [vmem:[#allocation2 + $0x20] sm:$0xff]  ;;  %v2408_v53 = vpack.c.bf16 %v466_v52, %v465_v51  ;;  %v470_v58 = vld [vmem:[%s2589_s5 + $0x38] sm:$0xff] }
  0x4b   :  { %1873 = vmatprep.subr.bf16.mxu1 %v2078_v16  ;;  %v140_v38 = vld [vmem:[#allocation2 + $0x22] sm:$0xff]  ;;  %1883 = vmatprep.mubr.bf16.mxu1 %v143_v36  ;;  %v141_v41 = vpack.c.bf16 %v130_v35, %v129_v34  ;;  %v144_v46 = vpack.c.bf16 %v132_v45, %v131_v44  ;;  %v2428_v59 = vpack.c.bf16 %v470_v58, %v469_v57  ;;  %v473_v63 = vld [vmem:[%s2589_s5 + $0x50] sm:$0xff]  ;;  %v474_v0 = vld [vmem:[%s2589_s5 + $0x58] sm:$0xff] }
  0x4c   :  { %1722 = vmatpush3.bf16.msra.mxu0 %v2077_v15  ;;  %v136_v40 = vld [vmem:[#allocation2 + $0x21] sm:$0xff]  ;;  %v146_v43 = vpack.c.bf16 %v140_v38, %v139_v37  ;;  %v2448_v1 = vpack.c.bf16 %v474_v0, %v473_v63  ;;  %v477_v6 = vld [vmem:[%s2589_s5 + $0x70] sm:$0xff]  ;;  %v478_v7 = vld [vmem:[%s2589_s5 + $0x78] sm:$0xff] }
  0x4d   :  { %1723 = vmatprep.subr.bf16.mxu0 %v2079_v17  ;;  %v145_v42 = vpack.c.bf16 %v136_v40, %v135_v39  ;;  %v463_v47 = vld [vmem:[%s2589_s5] sm:$0xff]  ;;  %v464_v48 = vld [vmem:[%s2589_s5 + $0x8] sm:$0xff]  ;;  %v2471_v8 = vpack.c.bf16 %v478_v7, %v477_v6  ;;  %v2091_v57 = vld [vmem:[#allocation7 + $0x40] sm:$0xff]  }
  0x4e   :  { %1874 = vmatpush3.bf16.msra.mxu1 %v2078_v16  ;;  %v2397_v49 = vpack.c.bf16 %v464_v48, %v463_v47  ;;  %v467_v54 = vld [vmem:[%s2589_s5 + $0x20] sm:$0xff]  ;;  %v468_v55 = vld [vmem:[%s2589_s5 + $0x28] sm:$0xff]  ;;  %v2092_v58 = vld [vmem:[#allocation7 + $0x80] sm:$0xff]  }
  0x4f   :  { %1875 = vmatprep.subr.bf16.mxu1 %v2081_v18  ;;  %v2418_v56 = vpack.c.bf16 %v468_v55, %v467_v54  ;;  %v471_v60 = vld [vmem:[%s2589_s5 + $0x40] sm:$0xff]  ;;  %v472_v61 = vld [vmem:[%s2589_s5 + $0x48] sm:$0xff] }
  0x50   :  { %1724 = vmatpush3.bf16.msra.mxu0 %v2080_v19  ;;  %v2438_v62 = vpack.c.bf16 %v472_v61, %v471_v60  ;;  %v475_v2 = vld [vmem:[%s2589_s5 + $0x60] sm:$0xff]  ;;  %v476_v3 = vld [vmem:[%s2589_s5 + $0x68] sm:$0xff]  ;;  %v2095_v60 = vld [vmem:[#allocation7 + $0x88] sm:$0xff]  }
  0x51   :  { %1725 = vmatprep.subr.bf16.mxu0 %v2082_v20  ;;  %v2458_v5 = vpack.c.bf16 %v476_v3, %v475_v2  ;;  %v2499_v55 = vld [vmem:[%s2590_s6] sm:$0xff] }
  0x52   :  { %1876 = vmatpush3.bf16.msra.mxu1 %v2081_v18 }
  0x53   :  { %1877 = vmatprep.subr.bf16.mxu1 %v2084_v21 }
  0x54   :  { %1726 = vmatpush3.bf16.msra.mxu0 %v2083_v22 }
  0x55   :  { %1727 = vmatprep.subr.bf16.mxu0 %v2085_v23 }
  0x56   :  { %1878 = vmatpush3.bf16.msra.mxu1 %v2084_v21 }
  0x57   :  { %1879 = vmatprep.subr.bf16.mxu1 %v2087_v24 }
  0x58   :  { %1728 = vmatpush3.bf16.msra.mxu0 %v2086_v25 }
  0x59   :  { %1729 = vmatprep.subr.bf16.mxu0 %v2088_v26 }
  0x5a   :  { %1880 = vmatpush3.bf16.msra.mxu1 %v2087_v24 }
  0x5b   :  { %1881 = vmatprep.subr.bf16.mxu1 %v2090_v33 }
  0x5c   :  { %1730 = vmatpush3.bf16.msra.mxu0 %v2089_v29 }
  0x5d   :  { %2007 = vmatprep.subr.bf16.mxu0 %v2271_v50 }
  0x5e   :  { %1882 = vmatpush3.bf16.msra.mxu1 %v2090_v33 }
  0x5f   :  { %372 = vmatmul.mubr.bf16.vlgmr.msra.gmra.mrb[0].mxu0 %v141_v41  ;;  %1922 = vmatprep.subr.mxu1 %v2270_v4 }
  0x60   :  { %379 = vmatprep.mubr.bf16.mxu0 %v145_v42  ;;  %2009 = vmatpush3.bf16.msra.mxu0 %v2397_v49 }
  0x61   :  { %1884 = vmatmul.mubr.bf16.vlgmr.msra.gmra.mrb[0].mxu1 %v146_v43  ;;  %2010 = vmatprep.subr.bf16.mxu0 %v2271_v50 }
  0x62   :  { %1924 = vmatprep.mubr.msk.f32.mxu1 %vm2272_vm0, %v2270_v4  ;;  %1923 = vmatpush3.msra.mxu1 %v2499_v55 }
  0x63   :  { %1772 = vmatprep.subr.bf16.mxu1 %v2091_v57 }
  0x64   :  { %2012 = vmatpush3.bf16.msra.mxu0 %v2408_v53 }
  0x65   :  { %2013 = vmatprep.subr.bf16.mxu0 %v2271_v50 }
  0x67   :  { %380 = vmatmul.mubr.bf16.gmra.mrb[4].mxu0 %v144_v46 }
  0x68   :  { %2015 = vmatpush3.bf16.msra.mxu0 %v2418_v56  ;;  %1919 = vmatprep.mubr.msk.f32.mxu0 %vm2272_vm0, %v2270_v4 }
  0x69   :  { %2016 = vmatprep.subr.bf16.mxu0 %v2271_v50 }
  0x6c   :  { %2018 = vmatpush3.bf16.msra.mxu0 %v2428_v59 }
  0x6d   :  { %2019 = vmatprep.subr.bf16.mxu0 %v2271_v50 }
  0x70   :  { %2021 = vmatpush3.bf16.msra.mxu0 %v2438_v62 }
  0x71   :  { %2022 = vmatprep.subr.bf16.mxu0 %v2271_v50 }
  0x74   :  { %2024 = vmatpush3.bf16.msra.mxu0 %v2448_v1 }
  0x75   :  { %2025 = vmatprep.subr.bf16.mxu0 %v2271_v50 }
  0x78   :  { %2027 = vmatpush3.bf16.msra.mxu0 %v2458_v5 }
  0x79   :  { %2028 = vmatprep.subr.bf16.mxu0 %v2271_v50 }
  0x7c   :  { %2030 = vmatpush3.bf16.msra.mxu0 %v2471_v8 }
  0x7d   :  { %1927 = vmatprep.subr.bf16.mxu0 %v2092_v58 }
 0x132   :  { %v1731_v9 = vpop.f32.mrb[0].mxu0 }
 0x133   :  { %v1732_v10 = vpop.f32.mrb[1].mxu0 }
 0x134   :  { %v1733_v11 = vadd.f32 %v1732_v10, %v1731_v9  ;;  %v1734_v12 = vpop.f32.mrb[2].mxu0  ;;  %v1885_v13 = vpop.f32.mrb[0].mxu1  ;;  %v2093_v9 = vld [vmem:[#allocation7] sm:$0xff]  }
 0x135   :  { %v1735_v14 = vpop.f32.mrb[3].mxu0  ;;  %v422_v15 = vpop.f32.mrb[1].mxu1 }
 0x136   :  { %v1736_v16 = vadd.f32 %v1735_v14, %v1734_v12  ;;  %v2475_v17 = vadd.f32 %v1733_v11, %v422_v15  ;;  %v1886_v18 = vpop.f32.mrb[2].mxu1  ;;  %v2094_v11 = vld [vmem:[#allocation7 + $0x48] sm:$0xff]   ;;  %v2097_v14 = vld [vmem:[#allocation7 + $0x50] sm:$0xff]  }
 0x137   :  { %v425_v19 = vpop.f32.mrb[3].mxu1  ;;  %v2098_v15 = vld [vmem:[#allocation7 + $0x90] sm:$0xff]  }
 0x138   :  { %v2477_v20 = vadd.f32 %v1736_v16, %v425_v19  ;;  %v448_v27 = vmul.f32 %v2475_v17, %v2475_v17  ;;  %v2099_v16 = vld [vmem:[#allocation7 + $0x10] sm:$0xff]   ;;  %v2101_v19 = vld [vmem:[#allocation7 + $0x98] sm:$0xff]  }
 0x13a   :  { %v1737_v21 = vpop.f32.mrb[4].mxu0  ;;  %v449_v23 = vmul.f32 %v2477_v20, %v2477_v20  ;;  %v439_v28 = vadd.f32 %v2477_v20, %v2475_v17 }
 0x13b   :  { %v1738_v22 = vpop.f32.mrb[5].mxu0 }
 0x13c   :  { %v1739_v24 = vadd.f32 %v1738_v22, %v1737_v21  ;;  %v1740_v25 = vpop.f32.mrb[6].mxu0  ;;  %v452_v31 = vadd.f32 %v449_v23, %v448_v27  ;;  %v2102_v21 = vld [vmem:[#allocation7 + $0x18] sm:$0xff]   ;;  %v2103_v22 = vld [vmem:[#allocation7 + $0x60] sm:$0xff]   ;;  %v2108_v27 = vld [vmem:[#allocation7 + $0x28] sm:$0xff]  }
 0x13d   :  { %v1741_v26 = vpop.f32.mrb[7].mxu0  ;;  %v2104_v23 = vld [vmem:[#allocation7 + $0xa0] sm:$0xff]  }
 0x13e   :  { %v2485_v29 = vadd.f32 %v1885_v13, %v1739_v24  ;;  %v1742_v30 = vadd.f32 %v1741_v26, %v1740_v25  ;;  %v2096_v13 = vld [vmem:[#allocation7 + $0x8] sm:$0xff]   ;;  %v2105_v24 = vld [vmem:[#allocation7 + $0x20] sm:$0xff]  }
 0x13f   :  { %v2106_v25 = vld [vmem:[#allocation7 + $0x68] sm:$0xff]  }
 0x140   :  { %v440_v32 = vadd.f32 %v439_v28, %v2485_v29  ;;  %v450_v33 = vmul.f32 %v2485_v29, %v2485_v29  ;;  %v2490_v34 = vadd.f32 %v1886_v18, %v1742_v30  ;;  %v2100_v18 = vld [vmem:[#allocation7 + $0x58] sm:$0xff]   ;;  %v2107_v26 = vld [vmem:[#allocation7 + $0xa8] sm:$0xff]   ;;  %v2109_v28 = vld [vmem:[#allocation7 + $0x70] sm:$0xff]  }
 0x141   :  { %v2110_v30 = vld [vmem:[#allocation7 + $0xb0] sm:$0xff]  }
 0x142   :  { %v453_v35 = vadd.f32 %v452_v31, %v450_v33  ;;  %v441_v36 = vadd.f32 %v440_v32, %v2490_v34  ;;  %v451_v37 = vmul.f32 %v2490_v34, %v2490_v34  ;;  %v2111_v31 = vld [vmem:[#allocation7 + $0x30] sm:$0xff]   ;;  %v2112_v32 = vld [vmem:[#allocation7 + $0x78] sm:$0xff]  }
 0x143   :  { %v2113_v33 = vld [vmem:[#allocation7 + $0xb8] sm:$0xff]  }
 0x144   :  { %v442_v38 = vrot.slane %v441_v36, 4  ;;  %v454_v39 = vadd.f32 %v453_v35, %v451_v37  ;;  %v2114_v35 = vld [vmem:[#allocation7 + $0x38] sm:$0xff]   ;;  %v437_v37 = vld [vmem:[%s2588_s4] sm:$0x1] }
 0x146   :  { %v443_v40 = vadd.f32 %v442_v38, %v441_v36  ;;  %v455_v41 = vrot.slane %v454_v39, 4  ;;  %v642_v36 = vlaneseq }
 0x148   :  { %v444_v42 = vrot.slane %v443_v40, 2  ;;  %v456_v43 = vadd.f32 %v455_v41, %v454_v39  ;;  %v2508_v38 = vshrl.u32 %v642_v36, 7  ;;  %v634_v39 = vrot.slane %v437_v37, 7 }
 0x14a   :  { %v445_v44 = vadd.f32 %v444_v42, %v443_v40  ;;  %v457_v45 = vrot.slane %v456_v43, 2  ;;  %v644_v41 = vsub.s32 1, %v2508_v38 }
 0x14c   :  { %v446_v46 = vrot.slane %v445_v44, 1  ;;  %v458_v47 = vadd.f32 %v457_v45, %v456_v43  ;;  %v438_v45 = vld [vmem:[%s2588_s4 + $0x1] sm:$0x1] }
 0x14e   :  { %v459_v48 = vrot.slane %v458_v47, 1  ;;  %v447_v51 = vadd.f32 %v446_v46, %v445_v44 }
 0x150   :  { %v460_v52 = vadd.f32 %v459_v48, %v458_v47  ;;  %v652_v48 = vsub.s32 0, %v2508_v38 }
 0x152   :  { %v462_v54 = vsel %vm461_vm1, %v447_v51, %v460_v52 }
 0x153   :  { %1920 = vmatmul.mubr.f32.vlgmr.msra.gmra.mrb[8].mxu0 %v462_v54 }
 0x154   :  { %1928 = vmatpush3.bf16.msra.mxu0 %v2092_v58 }
 0x155   :  { %1929 = vmatprep.subr.bf16.mxu0 %v2095_v60 }
 0x158   :  { %1930 = vmatpush3.bf16.msra.mxu0 %v2095_v60 }
 0x159   :  { %1931 = vmatprep.subr.bf16.mxu0 %v2098_v15 }
 0x15c   :  { %1932 = vmatpush3.bf16.msra.mxu0 %v2098_v15 }
 0x15d   :  { %1933 = vmatprep.subr.bf16.mxu0 %v2101_v19 }
 0x160   :  { %1934 = vmatpush3.bf16.msra.mxu0 %v2101_v19 }
 0x161   :  { %1935 = vmatprep.subr.bf16.mxu0 %v2104_v23 }
 0x164   :  { %1936 = vmatpush3.bf16.msra.mxu0 %v2104_v23 }
 0x165   :  { %1937 = vmatprep.subr.bf16.mxu0 %v2107_v26 }
 0x168   :  { %1938 = vmatpush3.bf16.msra.mxu0 %v2107_v26 }
 0x169   :  { %1939 = vmatprep.subr.bf16.mxu0 %v2110_v30 }
 0x16c   :  { %1940 = vmatpush3.bf16.msra.mxu0 %v2110_v30 }
 0x16d   :  { %1941 = vmatprep.subr.bf16.mxu0 %v2113_v33 }
 0x170   :  { %1942 = vmatpush3.bf16.msra.mxu0 %v2113_v33 }
 0x226   :  { %v545_v61 = vpop.f32.mrb[8].mxu0 }
 0x227   :  { %v549_v63 = vmul.f32 0.001953125, %v545_v61  ;;  %v1921_v0 = vpop.f32.mrb[9].mxu0 }
 0x229   :  { %v550_v2 = vmul.f32 %v549_v63, %v549_v63 }
 0x22b   :  { %v552_v3 = vrot.slane %v550_v2, 7 }
 0x22d   :  { %v554_v6 = vsub.f32 %v549_v63, %v552_v3 }
 0x22f   :  { %v555_v7 = vadd.f32 1e-05, %v554_v6 }
 0x231   :  { %2115 = vrsqrt.f32 %v555_v7 }
 0x23b   :  { %v2116_v10 = vpop.eup %2115 }
 0x23c   :  { %v557_v12 = vsel %vm461_vm1, %v549_v63, %v2116_v10 }
 0x23d   :  { %1925 = vmatmul.mubr.msk.f32.vlgmr.msra.gmra.mrb[4].mxu1 %vm559_vm2, %v557_v12 }
 0x23e   :  { %1773 = vmatpush3.bf16.msra.mxu1 %v2093_v9 }
 0x23f   :  { %1774 = vmatprep.subr.bf16.mxu1 %v2094_v11 }
 0x242   :  { %1775 = vmatpush3.bf16.msra.mxu1 %v2096_v13 }
 0x243   :  { %1776 = vmatprep.subr.bf16.mxu1 %v2097_v14 }
 0x246   :  { %1777 = vmatpush3.bf16.msra.mxu1 %v2099_v16 }
 0x247   :  { %1778 = vmatprep.subr.bf16.mxu1 %v2100_v18 }
 0x24a   :  { %1779 = vmatpush3.bf16.msra.mxu1 %v2102_v21 }
 0x24b   :  { %1780 = vmatprep.subr.bf16.mxu1 %v2103_v22 }
 0x24e   :  { %1781 = vmatpush3.bf16.msra.mxu1 %v2105_v24 }
 0x24f   :  { %1782 = vmatprep.subr.bf16.mxu1 %v2106_v25 }
 0x252   :  { %1783 = vmatpush3.bf16.msra.mxu1 %v2108_v27 }
 0x253   :  { %1784 = vmatprep.subr.bf16.mxu1 %v2109_v28 }
 0x256   :  { %1785 = vmatpush3.bf16.msra.mxu1 %v2111_v31 }
 0x257   :  { %1786 = vmatprep.subr.bf16.mxu1 %v2112_v32 }
 0x25a   :  { %1787 = vmatpush3.bf16.msra.mxu1 %v2114_v35 }
 0x25b   :  { %2031 = vmatprep.subr.bf16.mxu1 %v2271_v50 }
 0x310   :  { %v629_v40 = vpop.f32.mrb[4].mxu1 }
 0x311   :  { %v636_v42 = vmul.f32 %v634_v39, %v629_v40  ;;  %v1926_v43 = vpop.f32.mrb[5].mxu1 }
 0x313   :  { %v638_v44 = vrot.slane %v636_v42, 1  ;;  %v645_v46 = vrot.slane %v636_v42, %v644_v41 }
 0x315   :  { %v640_v47 = vmul.f32 %v638_v44, %v629_v40  ;;  %v646_v52 = vmul.f32 %v645_v46, %v2475_v17  ;;  %v647_v54 = vmul.f32 %v645_v46, %v2477_v20  ;;  %v648_v57 = vmul.f32 %v645_v46, %v2485_v29 }
 0x316   :  { %v649_v58 = vmul.f32 %v645_v46, %v2490_v34 }
 0x317   :  { %v641_v51 = vsub.f32 %v438_v45, %v640_v47 }
 0x319   :  { %v653_v60 = vrot.slane %v641_v51, %v652_v48 }
 0x31b   :  { %v654_v61 = vadd.f32 %v653_v60, %v646_v52  ;;  %v655_v63 = vadd.f32 %v653_v60, %v647_v54  ;;  %v656_v0 = vadd.f32 %v653_v60, %v648_v57  ;;  %v657_v2 = vadd.f32 %v653_v60, %v649_v58 }
 0x31d   :  { %v658_v3 = vmax.f32 %v654_v61, 0.0  ;;  %v659_v6 = vmax.f32 %v655_v63, 0.0  ;;  %v660_v7 = vmax.f32 %v656_v0, 0.0  ;;  %v661_v9 = vmax.f32 %v657_v2, 0.0 }
 0x31f   :  { %662 = vst [vmem:[#allocation2 + $0x1] sm:$0xff] %v658_v3  ;;  %663 = vst [vmem:[#allocation2 + $0x9] sm:$0xff] %v659_v6  ;;  %v679_v17 = vpack.c.bf16 %v659_v6, %v658_v3  ;;  %v682_v16 = vpack.c.bf16 %v661_v9, %v660_v7 }
 0x320   :  { %664 = vst [vmem:[#allocation2 + $0x19] sm:$0xff] %v660_v7  ;;  %665 = vst [vmem:[#allocation2 + $0x21] sm:$0xff] %v661_v9 }
 0x321   :  { %908 = vmatprep.mubr.bf16.mxu1 %v679_v17 }
 0x326   :  { %v674_v20 = vld [vmem:[#allocation2 + $0x2] sm:$0xff]  ;;  %v675_v29 = vld [vmem:[#allocation2 + $0xa] sm:$0xff] }
 0x327   :  { %v666_v34 = vld [vmem:[#allocation2] sm:$0xff]  ;;  %v680_v10 = vpack.c.bf16 %v675_v29, %v674_v20  ;;  %v667_v11 = vld [vmem:[#allocation2 + $0x8] sm:$0xff]  ;;  %v668_v18 = vld [vmem:[#allocation2 + $0x18] sm:$0xff] }
 0x328   :  { %v676_v12 = vld [vmem:[#allocation2 + $0x1a] sm:$0xff]  ;;  %v677_v13 = vld [vmem:[#allocation2 + $0x22] sm:$0xff]  ;;  %v678_v14 = vpack.c.bf16 %v667_v11, %v666_v34 }
 0x329   :  { %v683_v15 = vpack.c.bf16 %v677_v13, %v676_v12  ;;  %1943 = vmatprep.mubr.bf16.mxu0 %v680_v10  ;;  %v669_v19 = vld [vmem:[#allocation2 + $0x20] sm:$0xff] }
 0x32a   :  { %909 = vmatmul.mubr.bf16.vlgmr.msra.gmra.mrb[8].mxu1 %v678_v14  ;;  %v681_v21 = vpack.c.bf16 %v669_v19, %v668_v18  ;;  %v975_v18 = vld [vmem:[%s2588_s4 + $0x3] sm:$0x1] }
 0x32b   :  { %1944 = vmatmul.mubr.bf16.vlgmr.msra.gmra.mrb[12].mxu0 %v683_v15  ;;  %916 = vmatprep.mubr.bf16.mxu1 %v682_v16 }
 0x32c   :  { %2033 = vmatpush3.bf16.msra.mxu1 %v2397_v49 }
 0x32d   :  { %2034 = vmatprep.subr.bf16.mxu1 %v2271_v50 }
 0x330   :  { %2036 = vmatpush3.bf16.msra.mxu1 %v2408_v53 }
 0x331   :  { %2037 = vmatprep.subr.bf16.mxu1 %v2271_v50 }
 0x332   :  { %917 = vmatmul.mubr.bf16.gmra.mrb[12].mxu1 %v681_v21 }
 0x333   :  { %1979 = vmatprep.mubr.msk.f32.mxu1 %vm2272_vm0, %v2270_v4 }
 0x334   :  { %2039 = vmatpush3.bf16.msra.mxu1 %v2418_v56 }
 0x335   :  { %2040 = vmatprep.subr.bf16.mxu1 %v2271_v50 }
 0x338   :  { %2042 = vmatpush3.bf16.msra.mxu1 %v2428_v59 }
 0x339   :  { %2043 = vmatprep.subr.bf16.mxu1 %v2271_v50 }
 0x33c   :  { %2045 = vmatpush3.bf16.msra.mxu1 %v2438_v62 }
 0x33d   :  { %2046 = vmatprep.subr.bf16.mxu1 %v2271_v50 }
 0x340   :  { %2048 = vmatpush3.bf16.msra.mxu1 %v2448_v1 }
 0x341   :  { %2049 = vmatprep.subr.bf16.mxu1 %v2271_v50 }
 0x344   :  { %2051 = vmatpush3.bf16.msra.mxu1 %v2458_v5 }
 0x345   :  { %2052 = vmatprep.subr.bf16.mxu1 %v2271_v50 }
 0x348   :  { %2054 = vmatpush3.bf16.msra.mxu1 %v2471_v8 }
 0x349   :  { %1982 = vmatprep.subr.mxu1 %v2270_v4 }
 0x3fd   :  { %v1788_v49 = vpop.f32.mrb[8].mxu1 }
 0x3fe   :  { %v1945_v53 = vpop.f32.mrb[12].mxu0  ;;  %v1789_v56 = vpop.f32.mrb[9].mxu1 }
 0x3ff   :  { %v959_v59 = vpop.f32.mrb[13].mxu0  ;;  %v1790_v22 = vadd.f32 %v1789_v56, %v1788_v49  ;;  %v1791_v62 = vpop.f32.mrb[10].mxu1 }
 0x400   :  { %v1946_v23 = vpop.f32.mrb[14].mxu0  ;;  %v1792_v24 = vpop.f32.mrb[11].mxu1 }
 0x401   :  { %v962_v25 = vpop.f32.mrb[15].mxu0  ;;  %v960_v1 = vadd.f32 %v1790_v22, %v959_v59  ;;  %v1793_v26 = vadd.f32 %v1792_v24, %v1791_v62 }
 0x403   :  { %v963_v27 = vadd.f32 %v1793_v26, %v962_v25  ;;  %v985_v32 = vmul.f32 %v960_v1, %v960_v1 }
 0x405   :  { %v1794_v28 = vpop.f32.mrb[12].mxu1  ;;  %v986_v30 = vmul.f32 %v963_v27, %v963_v27  ;;  %v976_v33 = vadd.f32 %v963_v27, %v960_v1 }
 0x406   :  { %v1795_v5 = vpop.f32.mrb[13].mxu1 }
 0x407   :  { %v1796_v50 = vadd.f32 %v1795_v5, %v1794_v28  ;;  %v1797_v31 = vpop.f32.mrb[14].mxu1  ;;  %v989_v37 = vadd.f32 %v986_v30, %v985_v32 }
 0x408   :  { %v1798_v8 = vpop.f32.mrb[15].mxu1 }
 0x409   :  { %v968_v35 = vadd.f32 %v1945_v53, %v1796_v50  ;;  %v1799_v36 = vadd.f32 %v1798_v8, %v1797_v31 }
 0x40b   :  { %v977_v39 = vadd.f32 %v976_v33, %v968_v35  ;;  %v987_v40 = vmul.f32 %v968_v35, %v968_v35  ;;  %v971_v42 = vadd.f32 %v1946_v23, %v1799_v36 }
 0x40d   :  { %v990_v43 = vadd.f32 %v989_v37, %v987_v40  ;;  %v978_v44 = vadd.f32 %v977_v39, %v971_v42  ;;  %v988_v45 = vmul.f32 %v971_v42, %v971_v42 }
 0x40f   :  { %v979_v46 = vrot.slane %v978_v44, 4  ;;  %v991_v47 = vadd.f32 %v990_v43, %v988_v45 }
 0x411   :  { %v980_v51 = vadd.f32 %v979_v46, %v978_v44  ;;  %v992_v52 = vrot.slane %v991_v47, 4 }
 0x413   :  { %v981_v54 = vrot.slane %v980_v51, 2  ;;  %v993_v57 = vadd.f32 %v992_v52, %v991_v47 }
 0x415   :  { %v982_v58 = vadd.f32 %v981_v54, %v980_v51  ;;  %v994_v60 = vrot.slane %v993_v57, 2 }
 0x417   :  { %v983_v61 = vrot.slane %v982_v58, 1  ;;  %v995_v63 = vadd.f32 %v994_v60, %v993_v57 }
 0x419   :  { %v996_v0 = vrot.slane %v995_v63, 1  ;;  %v984_v2 = vadd.f32 %v983_v61, %v982_v58 }
 0x41b   :  { %v997_v3 = vadd.f32 %v996_v0, %v995_v63 }
 0x41d   :  { %v998_v6 = vsel %vm461_vm1, %v984_v2, %v997_v3 }
 0x41e   :  { %1980 = vmatmul.mubr.f32.vlgmr.msra.gmra.mrb[6].mxu1 %v998_v6 }
 0x41f   :  { %1983 = vmatpush3.msra.mxu1 %v2499_v55  ;;  %1984 = vmatprep.mubr.msk.f32.mxu1 %vm2272_vm0, %v2270_v4  ;;  %v974_v55 = vld [vmem:[%s2588_s4 + $0x2] sm:$0x1] }
 0x420   :  { %v1169_v13 = vrot.slane %v974_v55, 7 }
 0x4f1   :  { %v1081_v7 = vpop.f32.mrb[6].mxu1 }
 0x4f2   :  { %v1085_v9 = vmul.f32 0.001953125, %v1081_v7  ;;  %v1981_v17 = vpop.f32.mrb[7].mxu1 }
 0x4f4   :  { %v1086_v20 = vmul.f32 %v1085_v9, %v1085_v9 }
 0x4f6   :  { %v1088_v29 = vrot.slane %v1086_v20, 7 }
 0x4f8   :  { %v1090_v34 = vsub.f32 %v1085_v9, %v1088_v29 }
 0x4fa   :  { %v1091_v10 = vadd.f32 1e-05, %v1090_v34 }
 0x4fc   :  { %2117 = vrsqrt.f32 %v1091_v10 }
 0x506   :  { %v2118_v11 = vpop.eup %2117 }
 0x507   :  { %v1093_v12 = vsel %vm461_vm1, %v1085_v9, %v2118_v11 }
 0x508   :  { %1985 = vmatmul.mubr.msk.f32.vlgmr.msra.gmra.mrb[16].mxu1 %vm559_vm2, %v1093_v12 }
 0x5db   :  { %v1164_v14 = vpop.f32.mrb[16].mxu1 }
 0x5dc   :  { %v1171_v4 = vmul.f32 %v1169_v13, %v1164_v14  ;;  %v1986_v15 = vpop.f32.mrb[17].mxu1 }
 0x5de   :  { %v1173_v16 = vrot.slane %v1171_v4, 1  ;;  %v1180_v19 = vrot.slane %v1171_v4, %v644_v41 }
 0x5e0   :  { %v1175_v21 = vmul.f32 %v1173_v16, %v1164_v14  ;;  %v1181_v53 = vmul.f32 %v1180_v19, %v960_v1  ;;  %v1182_v56 = vmul.f32 %v1180_v19, %v963_v27  ;;  %v1183_v59 = vmul.f32 %v1180_v19, %v968_v35 }
 0x5e1   :  { %v1184_v22 = vmul.f32 %v1180_v19, %v971_v42 }
 0x5e2   :  { %v1176_v49 = vsub.f32 %v975_v18, %v1175_v21 }
 0x5e4   :  { %v1188_v62 = vrot.slane %v1176_v49, %v652_v48 }
 0x5e6   :  { %v1189_v23 = vadd.f32 %v1188_v62, %v1181_v53  ;;  %v1190_v24 = vadd.f32 %v1188_v62, %v1182_v56  ;;  %v1191_v25 = vadd.f32 %v1188_v62, %v1183_v59  ;;  %v1192_v26 = vadd.f32 %v1188_v62, %v1184_v22 }
 0x5e8   :  { %v1193_v28 = vmax.f32 %v1189_v23, 0.0  ;;  %v1194_v5 = vmax.f32 %v1190_v24, 0.0  ;;  %v1195_v30 = vmax.f32 %v1191_v25, 0.0  ;;  %v1196_v50 = vmax.f32 %v1192_v26, 0.0 }
 0x5ea   :  { %1197 = vst [vmem:[#allocation2 + $0x1] sm:$0xff] %v1193_v28  ;;  %1198 = vst [vmem:[#allocation2 + $0x9] sm:$0xff] %v1194_v5 }
 0x5eb   :  { %1199 = vst [vmem:[#allocation2 + $0x19] sm:$0xff] %v1195_v30  ;;  %1200 = vst [vmem:[#allocation2 + $0x21] sm:$0xff] %v1196_v50 }
 0x5ec   :  { %1237 = vst [vmem:[#allocation10] sm:$0xff] %v1193_v28  ;;  %1239 = vst [vmem:[#allocation10 + $0x8] sm:$0xff] %v1194_v5 }
 0x5ed   :  { %1241 = vst [vmem:[#allocation10 + $0x10] sm:$0xff] %v1195_v30  ;;  %1243 = vst [vmem:[#allocation10 + $0x18] sm:$0xff] %v1196_v50 }
 0x5ee   :  { %1251 = vsyncadd [#allocation3 + $0x1], 512  ;;  %v2119_v41 = vld [vmem:[#allocation9 + $0x40] sm:$0xff]   ;;  %v2121_v48 = vld [vmem:[#allocation9 + $0x48] sm:$0xff]  }
 0x5ef   :  { %v2120_v38 = vld [vmem:[#allocation9] sm:$0xff]   ;;  %1829 = vmatprep.subr.bf16.mxu0 %v2119_v41  ;;  %v2123_v27 = vld [vmem:[#allocation9 + $0x8] sm:$0xff]   ;;  %v2124_v31 = vld [vmem:[#allocation9 + $0x50] sm:$0xff]  }
 0x5f0   :  { %1830 = vmatpush3.bf16.msra.mxu0 %v2120_v38  ;;  %v2122_v1 = vld [vmem:[#allocation9 + $0x80] sm:$0xff]   ;;  %v2125_v8 = vld [vmem:[#allocation9 + $0x88] sm:$0xff]   ;;  %v2126_v32 = vld [vmem:[#allocation9 + $0x10] sm:$0xff]  }
 0x5f1   :  { %1831 = vmatprep.subr.bf16.mxu0 %v2121_v48  ;;  %1987 = vmatprep.subr.bf16.mxu1 %v2122_v1  ;;  %v2127_v33 = vld [vmem:[#allocation9 + $0x58] sm:$0xff]   ;;  %v2128_v35 = vld [vmem:[#allocation9 + $0x90] sm:$0xff]   ;;  %v2130_v37 = vld [vmem:[#allocation9 + $0x60] sm:$0xff]  }
 0x5f2   :  { %1988 = vmatpush3.bf16.msra.mxu1 %v2122_v1  ;;  %v2129_v36 = vld [vmem:[#allocation9 + $0x18] sm:$0xff]   ;;  %v2132_v40 = vld [vmem:[#allocation9 + $0x20] sm:$0xff]   ;;  %v2133_v43 = vld [vmem:[#allocation9 + $0x68] sm:$0xff]  }
 0x5f3   :  { %1989 = vmatprep.subr.bf16.mxu1 %v2125_v8  ;;  %v2131_v39 = vld [vmem:[#allocation9 + $0x98] sm:$0xff]   ;;  %v2134_v42 = vld [vmem:[#allocation9 + $0xa0] sm:$0xff]   ;;  %v2135_v44 = vld [vmem:[#allocation9 + $0x28] sm:$0xff]  }
 0x5f4   :  { %1832 = vmatpush3.bf16.msra.mxu0 %v2123_v27  ;;  %v2137_v45 = vld [vmem:[#allocation9 + $0xa8] sm:$0xff]   ;;  %v2136_v46 = vld [vmem:[#allocation9 + $0x70] sm:$0xff]   ;;  %v1257_v51 = vld [vmem:[#allocation2 + $0x9] sm:$0xff] }
 0x5f5   :  { %1833 = vmatprep.subr.bf16.mxu0 %v2124_v31  ;;  %v1256_v47 = vld [vmem:[#allocation2 + $0x1] sm:$0xff]  ;;  %v1261_v61 = vld [vmem:[#allocation2 + $0xa] sm:$0xff]  ;;  %v1258_v7 = vld [vmem:[#allocation2 + $0x19] sm:$0xff] }
 0x5f6   :  { %1990 = vmatpush3.bf16.msra.mxu1 %v2125_v8  ;;  %v2138_v52 = vld [vmem:[#allocation9 + $0x30] sm:$0xff]   ;;  %v1265_v57 = vpack.c.bf16 %v1257_v51, %v1256_v47  ;;  %v2139_v58 = vld [vmem:[#allocation9 + $0x78] sm:$0xff]   ;;  %v1254_v11 = vld [vmem:[#allocation2 + $0x18] sm:$0xff] }
 0x5f7   :  { %1991 = vmatprep.subr.bf16.mxu1 %v2128_v35  ;;  %v2140_v54 = vld [vmem:[#allocation9 + $0xb0] sm:$0xff]   ;;  %v2141_v63 = vld [vmem:[#allocation9 + $0x38] sm:$0xff]  }
 0x5f8   :  { %1834 = vmatpush3.bf16.msra.mxu0 %v2126_v32  ;;  %v1260_v60 = vld [vmem:[#allocation2 + $0x2] sm:$0xff]  ;;  %1499 = vmatprep.mubr.bf16.mxu0 %v1265_v57  ;;  %v1262_v20 = vld [vmem:[#allocation2 + $0x1a] sm:$0xff] }
 0x5f9   :  { %1835 = vmatprep.subr.bf16.mxu0 %v2127_v33  ;;  %v1266_v0 = vpack.c.bf16 %v1261_v61, %v1260_v60  ;;  %v1252_v2 = vld [vmem:[#allocation2] sm:$0xff]  ;;  %v1253_v3 = vld [vmem:[#allocation2 + $0x8] sm:$0xff] }
 0x5fa   :  { %1992 = vmatpush3.bf16.msra.mxu1 %v2128_v35  ;;  %v2142_v6 = vld [vmem:[#allocation9 + $0xb8] sm:$0xff]   ;;  %v1264_v17 = vpack.c.bf16 %v1253_v3, %v1252_v2  ;;  %v1255_v12 = vld [vmem:[#allocation2 + $0x20] sm:$0xff] }
 0x5fb   :  { %1993 = vmatprep.subr.bf16.mxu1 %v2131_v39  ;;  %2003 = vmatprep.mubr.bf16.mxu1 %v1266_v0  ;;  %v1259_v9 = vld [vmem:[#allocation2 + $0x21] sm:$0xff]  ;;  %v1267_v55 = vpack.c.bf16 %v1255_v12, %v1254_v11 }
 0x5fc   :  { %1836 = vmatpush3.bf16.msra.mxu0 %v2129_v36  ;;  %v1263_v29 = vld [vmem:[#allocation2 + $0x22] sm:$0xff]  ;;  %v1268_v34 = vpack.c.bf16 %v1259_v9, %v1258_v7 }
 0x5fd   :  { %1837 = vmatprep.subr.bf16.mxu0 %v2130_v37  ;;  %v1269_v10 = vpack.c.bf16 %v1263_v29, %v1262_v20  ;;  %v1688_v4 = vld [vmem:[%s2588_s4 + $0x4] ss:$0 sm:$0xff] }
 0x5fe   :  { %1994 = vmatpush3.bf16.msra.mxu1 %v2131_v39 }
 0x5ff   :  { %1995 = vmatprep.subr.bf16.mxu1 %v2134_v42 }
 0x600   :  { %1838 = vmatpush3.bf16.msra.mxu0 %v2132_v40 }
 0x601   :  { %1839 = vmatprep.subr.bf16.mxu0 %v2133_v43 }
 0x602   :  { %1996 = vmatpush3.bf16.msra.mxu1 %v2134_v42 }
 0x603   :  { %1997 = vmatprep.subr.bf16.mxu1 %v2137_v45 }
 0x604   :  { %1840 = vmatpush3.bf16.msra.mxu0 %v2135_v44 }
 0x605   :  { %1841 = vmatprep.subr.bf16.mxu0 %v2136_v46 }
 0x606   :  { %1998 = vmatpush3.bf16.msra.mxu1 %v2137_v45 }
 0x607   :  { %1999 = vmatprep.subr.bf16.mxu1 %v2140_v54 }
 0x608   :  { %1842 = vmatpush3.bf16.msra.mxu0 %v2138_v52 }
 0x609   :  { %1843 = vmatprep.subr.bf16.mxu0 %v2139_v58 }
 0x60a   :  { %2000 = vmatpush3.bf16.msra.mxu1 %v2140_v54 }
 0x60b   :  { %2001 = vmatprep.subr.bf16.mxu1 %v2142_v6 }
 0x60c   :  { %1844 = vmatpush3.bf16.msra.mxu0 %v2141_v63 }
 0x60e   :  { %2002 = vmatpush3.bf16.msra.mxu1 %v2142_v6 }
 0x60f   :  { %1500 = vmatmul.mubr.bf16.vlgmr.msra.gmra.mrb[16].mxu0 %v1264_v17 }
 0x610   :  { %1507 = vmatprep.mubr.bf16.mxu0 %v1268_v34 }
 0x611   :  { %2004 = vmatmul.mubr.bf16.vlgmr.msra.gmra.mrb[20].mxu1 %v1269_v10 }
 0x617   :  { %1508 = vmatmul.mubr.bf16.gmra.mrb[20].mxu0 %v1267_v55 }
 0x6e2   :  { %v1845_v13 = vpop.f32.mrb[16].mxu0 }
 0x6e3   :  { %v1846_v14 = vpop.f32.mrb[17].mxu0 }
 0x6e4   :  { %v1847_v15 = vadd.f32 %v1846_v14, %v1845_v13  ;;  %v1848_v16 = vpop.f32.mrb[18].mxu0  ;;  %v2005_v19 = vpop.f32.mrb[20].mxu1 }
 0x6e5   :  { %v1849_v18 = vpop.f32.mrb[19].mxu0  ;;  %v1550_v53 = vpop.f32.mrb[21].mxu1 }
 0x6e6   :  { %v1850_v21 = vadd.f32 %v1849_v18, %v1848_v16  ;;  %v1502_v49 = vadd.f32 %v1847_v15, %v1688_v4  ;;  %v2006_v56 = vpop.f32.mrb[22].mxu1 }
 0x6e7   :  { %v1553_v62 = vpop.f32.mrb[23].mxu1 }
 0x6e8   :  { %v1551_v59 = vadd.f32 %v1550_v53, %v1502_v49  ;;  %v1505_v22 = vadd.f32 %v1850_v21, %v1688_v4 }
 0x6ea   :  { %v1565_v23 = vmax.f32 %v1551_v59, 0.0  ;;  %v1554_v24 = vadd.f32 %v1553_v62, %v1505_v22  ;;  %v1851_v25 = vpop.f32.mrb[20].mxu0 }
 0x6eb   :  { %v1852_v26 = vpop.f32.mrb[21].mxu0 }
 0x6ec   :  { %1569 = vst [vmem:[#allocation11] sm:$0xff] %v1565_v23  ;;  %v1566_v28 = vmax.f32 %v1554_v24, 0.0  ;;  %v1853_v5 = vadd.f32 %v1852_v26, %v1851_v25  ;;  %v1854_v30 = vpop.f32.mrb[22].mxu0 }
 0x6ed   :  { %v1855_v50 = vpop.f32.mrb[23].mxu0 }
 0x6ee   :  { %1570 = vst [vmem:[#allocation11 + $0x8] sm:$0xff] %v1566_v28  ;;  %v1510_v41 = vadd.f32 %v1853_v5, %v1688_v4  ;;  %v1856_v38 = vadd.f32 %v1855_v50, %v1854_v30 }
 0x6f0   :  { %v1559_v48 = vadd.f32 %v2005_v19, %v1510_v41  ;;  %v1513_v1 = vadd.f32 %v1856_v38, %v1688_v4 }
 0x6f2   :  { %v1567_v27 = vmax.f32 %v1559_v48, 0.0  ;;  %v1562_v31 = vadd.f32 %v2006_v56, %v1513_v1 }
 0x6f4   :  { %1571 = vst [vmem:[#allocation11 + $0x10] sm:$0xff] %v1567_v27  ;;  %v1568_v8 = vmax.f32 %v1562_v31, 0.0 }
 0x6f6   :  { %1572 = vst [vmem:[#allocation11 + $0x18] sm:$0xff] %v1568_v8 }
 0x6f7   :  { %2259 = dma.done.wait [#allocation3 + $0x1], 512 }
 0x6f8   :  { %2260 = vsyncadd [#allocation3 + $0x1], 4294966784  ;;  %s2273_s4 = smov [#allocation10]  }
 0x6f9   :  { %s1580_s1 = sshll.u32 %s2273_s4, 4  ;;  %s1581_s1 = int_to_ptr.vmem [resolvable:$true] %s1580_s1 }
 0x6fa   :  { %s2209_s30 = scalar_lea.vmem %s1581_s1, 512  ;;  %p2214_p11 = scmp.lt.s32.totalorder %s1581_s1, %s1581_s1 }
 0x6fb   :  { %p2210_p10 = scmp.ne.s32.totalorder %s1581_s1, %s2209_s30  ;;  %p2215_p12 = scmp.lt.s32.totalorder %s2209_s30, %s2209_s30 }
 0x6fd   :  { %p2216_p13 = por %p2215_p12, %p2214_p11 }
 0x6ff   :  { %p2217_p0 = pnand %p2216_p13, %p2210_p10 }
 0x701   :  { %2220 = shalt.err (!%p2217_p0)
}
 0x702   :  { %s2221_s23 = scalar_lea.hbm %s2591_s7, 512 }
 0x703   :  { %p2222_p1 = scmp.ne.s32.totalorder %s2591_s7, %s2221_s23  ;;  %p2225_p2 = scmp.lt.u32.totalorder %s2221_s23, %s2591_s7 }
 0x705   :  { %p2227_p3 = pnand %p2225_p2, %p2222_p1 }
 0x707   :  { %2230 = shalt.err (!%p2227_p3)
}
 0x708   :  { %s2274_s17 = smov 128   ;;  %s2275_s0 = smov 8  }
 0x709   :  { %1586 = dma.vmem_to_hbm [thread:$0]  %s1581_s1, 512, %s2591_s7, [#allocation6], %s2274_s17, %s2274_s17, %s2275_s0  }
 0x70a   :  { %s2276_s29 = smov [#allocation11]  }
 0x70b   :  { %s1592_s2 = sshll.u32 %s2276_s29, 4  ;;  %s1593_s2 = int_to_ptr.vmem [resolvable:$true] %s1592_s2 }
 0x70c   :  { %s2231_s28 = scalar_lea.vmem %s1593_s2, 512  ;;  %p2236_p5 = scmp.lt.s32.totalorder %s1593_s2, %s1593_s2 }
 0x70d   :  { %p2232_p4 = scmp.ne.s32.totalorder %s1593_s2, %s2231_s28  ;;  %p2237_p6 = scmp.lt.s32.totalorder %s2231_s28, %s2231_s28 }
 0x70f   :  { %p2238_p7 = por %p2237_p6, %p2236_p5 }
 0x711   :  { %p2239_p8 = pnand %p2238_p7, %p2232_p4 }
 0x713   :  { %2242 = shalt.err (!%p2239_p8)
}
 0x714   :  { %s2243_s6 = scalar_lea.hbm %s2592_s8, 512 }
 0x715   :  { %p2244_p9 = scmp.ne.s32.totalorder %s2592_s8, %s2243_s6  ;;  %p2247_p10 = scmp.lt.u32.totalorder %s2243_s6, %s2592_s8 }
 0x717   :  { %p2249_p11 = pnand %p2247_p10, %p2244_p9 }
 0x719   :  { %2252 = shalt.err (!%p2249_p11)
}
 0x71a   :  { %1598 = dma.vmem_to_hbm [thread:$0]  %s1593_s2, 512, %s2592_s8, [#allocation12], %s2274_s17, %s2274_s17, %s2275_s0  }
 0x71b   :  { %2261 = dma.done.wait [#allocation6], 512  }
 0x71c   :  { %2262 = vsyncadd [#allocation6], 4294966784 }
 0x71d   :  { %2263 = dma.done.wait [#allocation12], 512  }
 0x71e   :  { %2264 = vsyncadd [#allocation12], 4294966784 }
 0x71f   :  { %1605 = vsyncpa [#allocation5], 1 }
 0x720   :  { %1606 = vsyncpa [#allocation8], 1 }
 0x721   :  { %1607 = vsyncpa [#allocation6], 1 }
 0x722   :  { %1608 = vsyncpa [#allocation12], 1 }
 0x723   :  { %1609 = vsyncmov [#allocation3] }
 0x726   :  { %s1610_s15 = vpop.sfrf %1609 }
 0x727   :  { %p1713_p12 = scmp.ne.s32.totalorder %s1610_s15, 0 }
 0x729   :  { %1614 = shalt.err (%p1713_p12)  }
 0x72a   :  { %1616 = vsyncmov [#allocation3 + $0x1] }
 0x72d   :  { %s1617_s16 = vpop.sfrf %1616 }
 0x72e   :  { %p1714_p13 = scmp.ne.s32.totalorder %s1617_s16, 0 }
 0x730   :  { %1621 = shalt.err (%p1714_p13)  }

</bundles_post_ra>
